<compile_context>
chip_gen: v5e
topology: v5e:2x2
jax: 0.10.0
libtpu: 0.0.40
codegen_flags: <defaults>
</compile_context>

<pallas_src>
import functools

import jax
import jax.numpy as jnp
from jax.experimental import pallas as pl
from jax.experimental.pallas import tpu as pltpu

_LANES = 128
_SUBLANES = 8


def _pow_int(u, g: int):
    """u**g for non-negative integer g via repeated multiplies (VPU only)."""
    if g == 0:
        return jnp.ones_like(u)
    result = None
    base = u
    while g > 0:
        if g & 1:
            result = base if result is None else result * base
        g >>= 1
        if g:
            base = base * base
    return result


def _focal_loss_kernel(inp_ref, tgt_ref, out_ref, *, gamma, alpha):
    i = pl.program_id(1)  # reduction ("arbitrary") axis

    @pl.when(i == 0)
    def _():
        out_ref[...] = jnp.zeros_like(out_ref)

    x = inp_ref[...].astype(jnp.float32)
    t = tgt_ref[...].astype(jnp.float32)

    # pt = p if y == 1 else (1 - p)
    pt = t * x + (1.0 - t) * (1.0 - x)
    u = 1.0 - pt
    if float(gamma).is_integer() and gamma >= 0:
        w = _pow_int(u, int(gamma))          # VPU-only, no extra transcendentals
    else:
        w = jnp.power(u, gamma)              # fallback for non-integer gamma
    focal = (-alpha) * w * jnp.log(pt + 1e-9)

    # Fold the (block_rows, 128) tile down to one (8, 128) vreg with pure VPU
    # adds (the reshape matches the (8,128) tiling, so it is layout-free), and
    # accumulate into the resident output block.
    rows = focal.shape[0]
    partial = jnp.sum(focal.reshape(rows // _SUBLANES, _SUBLANES, _LANES), axis=0)
    out_ref[...] += partial


def focal_loss(inputs, targets, *, gamma=2.0, alpha=0.5,
               target_block_bytes=2 * 1024 * 1024, num_partitions=2):
    """inputs, targets: (N, C) arrays. Returns a scalar f32 loss."""
    assert inputs.shape == targets.shape and inputs.ndim == 2
    n, c = inputs.shape
    e = n * c
    itemsize = jnp.dtype(inputs.dtype).itemsize

    # Lane-dense flatten: (N, C) -> (rows, 128), padded with zero-contribution
    # elements (input=1, target=1 => pt=1 => focal=0).
    rows_needed = pl.cdiv(e, _LANES)
    rows_rounded = pl.cdiv(rows_needed, _SUBLANES) * _SUBLANES
    max_block_rows = max(
        _SUBLANES,
        (target_block_bytes // (_LANES * itemsize)) // _SUBLANES * _SUBLANES)
    block_rows = int(min(max_block_rows, rows_rounded))

    chunk = num_partitions * block_rows
    padded_rows = pl.cdiv(rows_needed, chunk) * chunk
    steps_per_part = padded_rows // chunk

    x = jnp.ravel(inputs)
    t = jnp.ravel(targets)
    pad_elems = padded_rows * _LANES - e
    if pad_elems:
        x = jnp.concatenate([x, jnp.ones((pad_elems,), x.dtype)])
        t = jnp.concatenate([t, jnp.ones((pad_elems,), t.dtype)])
    x = x.reshape(padded_rows, _LANES)
    t = t.reshape(padded_rows, _LANES)

    kernel = functools.partial(
        _focal_loss_kernel, gamma=float(gamma), alpha=float(alpha))

    cost = pl.CostEstimate(
        flops=9 * padded_rows * _LANES,
        transcendentals=padded_rows * _LANES,
        bytes_accessed=2 * padded_rows * _LANES * itemsize
        + num_partitions * _SUBLANES * _LANES * 4,
    )

    in_spec = pl.BlockSpec((block_rows, _LANES),
                           lambda p, i: (p * steps_per_part + i, 0))

    partials = pl.pallas_call(
        kernel,
        out_shape=jax.ShapeDtypeStruct(
            (num_partitions * _SUBLANES, _LANES), jnp.float32),
        grid_spec=pltpu.PrefetchScalarGridSpec(
            num_scalar_prefetch=0,
            grid=(num_partitions, steps_per_part),
            in_specs=[in_spec, in_spec],
            out_specs=pl.BlockSpec((_SUBLANES, _LANES), lambda p, i: (p, 0)),
        ),
        compiler_params=pltpu.CompilerParams(
            dimension_semantics=("parallel", "arbitrary")),
        cost_estimate=cost,
    )(x, t)

    # Tiny final reduction (num_partitions * 8 * 128 elems) + mean over batch.
    return jnp.sum(partials) / jnp.float32(n)


def focal_loss_ref(inputs, targets, *, gamma=2.0, alpha=0.5):
    pt = targets * inputs + (1.0 - targets) * (1.0 - inputs)
    focal = -alpha * (1.0 - pt) ** gamma * jnp.log(pt + 1e-9)
    return jnp.mean(jnp.sum(focal, axis=1))


if __name__ == "__main__":
    key = jax.random.PRNGKey(0)
    k1, k2 = jax.random.split(key)

    n, c = 8, 32
    # "input" is probabilities in (0, 1); "target" is multilabel {0, 1}
    inputs = jax.nn.sigmoid(jax.random.normal(k1, (n, c), dtype=jnp.float32))
    targets = (jax.random.uniform(k2, (n, c)) > 0.5).astype(jnp.float32)

    loss = jax.block_until_ready(focal_loss(inputs, targets, gamma=2.0, alpha=0.5))
    ref = jax.block_until_ready(focal_loss_ref(inputs, targets, gamma=2.0, alpha=0.5))

    assert jnp.allclose(loss, ref, rtol=1e-5, atol=1e-5), (loss, ref)
    print("KERNEL_OK")
</pallas_src>

<mosaic_0001>
module attributes {stable_mosaic.version = 11 : i64} {
  func.func @_focal_loss_kernel(%arg0: i32, %arg1: i32, %arg2: memref<8x128xf32, #tpu.memory_space<vmem>>, %arg3: memref<8x128xf32, #tpu.memory_space<vmem>>, %arg4: memref<8x128xf32, #tpu.memory_space<vmem>>) attributes {dimension_semantics = [#tpu.dimension_semantics<parallel>, #tpu.dimension_semantics<arbitrary>], iteration_bounds = array<i64: 2, 1>, scalar_prefetch = 0 : i64, scratch_operands = 0 : i64, tpu.core_type = #tpu.core_type<tc>, window_params = [{transform_indices = @transform_0, window_bounds = array<i64: 8, 128>}, {transform_indices = @transform_1, window_bounds = array<i64: 8, 128>}, {transform_indices = @transform_2, window_bounds = array<i64: 8, 128>}]} {
    %c0_i32 = arith.constant 0 : i32
    %0 = arith.cmpi eq, %arg1, %c0_i32 : i32
    %1 = arith.extui %0 : i1 to i32
    %c0_i32_0 = arith.constant 0 : i32
    %2 = arith.cmpi ne, %1, %c0_i32_0 : i32
    scf.if %2 {
      %cst_13 = arith.constant 0.000000e+00 : f32
      %26 = vector.broadcast %cst_13 : f32 to vector<8x128xf32>
      %c0_14 = arith.constant 0 : index
      %c0_15 = arith.constant 0 : index
      %27 = vector.load %arg4[%c0_14, %c0_15] : memref<8x128xf32, #tpu.memory_space<vmem>>, vector<8x128xf32>
      tpu.vector_store %arg4[%c0_14, %c0_15], %26 {strides = array<i32>} : memref<8x128xf32, #tpu.memory_space<vmem>>, vector<8x128xf32>,
    } else {
    }
    %c0 = arith.constant 0 : index
    %c0_1 = arith.constant 0 : index
    %3 = vector.load %arg2[%c0, %c0_1] : memref<8x128xf32, #tpu.memory_space<vmem>>, vector<8x128xf32>
    %c0_2 = arith.constant 0 : index
    %c0_3 = arith.constant 0 : index
    %4 = vector.load %arg3[%c0_2, %c0_3] : memref<8x128xf32, #tpu.memory_space<vmem>>, vector<8x128xf32>
    %5 = arith.mulf %4, %3 : vector<8x128xf32>
    %cst = arith.constant 1.000000e+00 : f32
    %6 = vector.broadcast %cst : f32 to vector<8x128xf32>
    %7 = arith.subf %6, %4 : vector<8x128xf32>
    %cst_4 = arith.constant 1.000000e+00 : f32
    %8 = vector.broadcast %cst_4 : f32 to vector<8x128xf32>
    %9 = arith.subf %8, %3 : vector<8x128xf32>
    %10 = arith.mulf %7, %9 : vector<8x128xf32>
    %11 = arith.addf %5, %10 : vector<8x128xf32>
    %cst_5 = arith.constant 1.000000e+00 : f32
    %12 = vector.broadcast %cst_5 : f32 to vector<8x128xf32>
    %13 = arith.subf %12, %11 : vector<8x128xf32>
    %14 = arith.mulf %13, %13 : vector<8x128xf32>
    %cst_6 = arith.constant -5.000000e-01 : f32
    %15 = vector.broadcast %cst_6 : f32 to vector<8x128xf32>
    %16 = arith.mulf %15, %14 : vector<8x128xf32>
    %cst_7 = arith.constant 9.99999971E-10 : f32
    %17 = vector.broadcast %cst_7 : f32 to vector<8x128xf32>
    %18 = arith.addf %11, %17 : vector<8x128xf32>
    %19 = math.log %18 : vector<8x128xf32>
    %20 = arith.mulf %16, %19 : vector<8x128xf32>
    %21 = vector.shape_cast %20 : vector<8x128xf32> to vector<1x8x128xf32>
    %cst_8 = arith.constant dense<0.000000e+00> : vector<8x128xf32>
    %22 = vector.multi_reduction <add>, %21, %cst_8 [0] : vector<1x8x128xf32> to vector<8x128xf32>
    %c0_9 = arith.constant 0 : index
    %c0_10 = arith.constant 0 : index
    %23 = vector.load %arg4[%c0_9, %c0_10] : memref<8x128xf32, #tpu.memory_space<vmem>>, vector<8x128xf32>
    %24 = arith.addf %23, %22 : vector<8x128xf32>
    %c0_11 = arith.constant 0 : index
    %c0_12 = arith.constant 0 : index
    %25 = vector.load %arg4[%c0_11, %c0_12] : memref<8x128xf32, #tpu.memory_space<vmem>>, vector<8x128xf32>
    tpu.vector_store %arg4[%c0_11, %c0_12], %24 {strides = array<i32>} : memref<8x128xf32, #tpu.memory_space<vmem>>, vector<8x128xf32>,
    return
  }
  func.func @transform_0(%arg0: i32, %arg1: i32) -> (i32, i32) {
    %c1_i32 = arith.constant 1 : i32
    %0 = arith.muli %arg0, %c1_i32 : i32
    %1 = arith.addi %0, %arg1 : i32
    %c0_i32 = arith.constant 0 : i32
    %c0_i32_0 = arith.constant 0 : i32
    return %1, %c0_i32 : i32, i32
  }
  func.func @transform_1(%arg0: i32, %arg1: i32) -> (i32, i32) {
    %c1_i32 = arith.constant 1 : i32
    %0 = arith.muli %arg0, %c1_i32 : i32
    %1 = arith.addi %0, %arg1 : i32
    %c0_i32 = arith.constant 0 : i32
    %c0_i32_0 = arith.constant 0 : i32
    return %1, %c0_i32 : i32, i32
  }
  func.func @transform_2(%arg0: i32, %arg1: i32) -> (i32, i32) {
    %c0_i32 = arith.constant 0 : i32
    %c0_i32_0 = arith.constant 0 : i32
    return %arg0, %c0_i32 : i32, i32
  }
}

</mosaic_0001>

<bundles_post_ra>
// kernel: tpu_custom_call.1
= control target key start
LH: loop header
LB: loop body
LE: loop exit
PB: predicated region body
PF: predicated region fallthrough
CT: control target
= control target key end

     0   :  { %7 = vsyncpa [#allocation3], 0  ;;  %s744_s0 = inlined_call_operand.hbm [shape: f32[16,128], index: 0, kind: input, shape index: {}]   ;;  %s745_s1 = inlined_call_operand.hbm [shape: f32[16,128], index: 1, kind: input, shape index: {}]   ;;  %s746_s2 = inlined_call_operand.hbm [shape: f32[16,128], index: 2, kind: output, shape index: {}]  }
   0x1   :  { %9 = vsyncpa [#allocation3 + $0x1], 0 }
   0x2   :  { %10 = vsyncpa [#allocation6], 0 }
   0x3   :  { %12 = vsyncpa [#allocation6 + $0x1], 0 }
   0x4   :  { %13 = vsyncpa [#allocation4], 0 }
   0x5   :  { %15 = vsyncpa [#allocation4 + $0x1], 0  ;;  %s611_s9 = smov 0   ;;  %s613_s10 = smov 0  }
   0x6   :  { %s615_s11 = smov 0   ;;  %s617_s12 = smov 0  }
   0x7   :  { %s619_s13 = smov 0   ;;  %s621_s14 = smov 0  }
   0x8 LB: > { %s362_s15 = sadd.s32 4294967295, %s594_s14   ;;  %s363_s16 = sadd.s32 4294967294, %s594_s14   ;;  %s594_s14 = sphi %s621_s14, %s21_s14   ;;  %s590_s13 = sphi %s619_s13, %s755_s13   ;;  %s586_s12 = sphi %s617_s12, %s754_s12   ;;  %s582_s11 = sphi %s615_s11, %s753_s11   ;;  %s578_s10 = sphi %s613_s10, %s752_s10   ;;  %s574_s9 = sphi %s611_s9, %s751_s9  }
   0x9   : > { %s33_s17 = sadd.s32 1, %s590_s13  ;;  %s42_s18 = sadd.s32 1, %s582_s11 }
   0xa   : > { %p35_p0 = scmp.ge.s32.totalorder %s33_s17, 2  ;;  %p49_p1 = scmp.ne.s32.totalorder %s582_s11, %s578_s10 }
   0xb   : > { %p50_p2 = scmp.eq.s32.totalorder %s594_s14, 0  ;;  %p55_p3 = scmp.ne.s32.totalorder %s578_s10, %s574_s9 }
   0xc   : > { %s757_s17 = smov (%p35_p0, %s33_s17), 0  ;;  %p56_p5 = scmp.eq.s32.totalorder %s362_s15, 0 }
   0xd   : > { %p652_p4 = por %p50_p2, %p49_p1  ;;  %s39_s20 = ssub.s32 %s590_s13, %s757_s17 }
   0xe   : > { %p107_p6 = scmp.eq.s32.totalorder %s362_s15, 1  ;;  %p40_p7 = scmp.eq.s32.totalorder %s39_s20, 0 }
   0xf   : > { %p658_p8 = por %p56_p5, %p55_p3  ;;  %p113_p10 = scmp.eq.s32.totalorder %s363_s16, 1 }
  0x10   : > { %p662_p9 = por %p107_p6, %p49_p1  ;;  %p365_p12 = scmp.ge.s32.totalorder %s594_s14, 2 }
  0x11   : > { %s667_s23 = scalar_select %p40_p7, %s582_s11, %s42_s18  }
  0x12   : > { %p669_p11 = por %p113_p10, %p55_p3  ;;  %p395_p13 = scmp.lt.s32.totalorder %s594_s14, 2 }
  0x13   : > { %s133_s25 = sand.u32 1, %s582_s11   ;;  %s367_s27 = sshll.u32 %s590_s13, 3 }
  0x14   : > { %s366_s26 = sshll.u32 %s133_s25, 3  ;;  %s142_s30 = scalar_lea.hbm %s744_s0, %s367_s27 }
  0x15   : > { %s137_s3 = scalar_lea.vmem [#allocation2], %s366_s26  ;;  %s144_s5 = sshll.u32 %s142_s30, 4  ;;  %s145_s5 = int_to_ptr.hbm [resolvable:$true] %s144_s5 }
  0x16   : > { %s146_s4 = sshll.u32 %s137_s3, 4  ;;  %p385_p0 = pnand %p395_p13, %p652_p4  ;;  %s147_s4 = int_to_ptr.vmem [resolvable:$true] %s146_s4 }
  0x17   : > { %p370_p1 = scmp.ge.s32.totalorder %s594_s14, 1  ;;  %p171_p2 = scmp.lt.s32.totalorder %s594_s14, 3 }
  0x18   : > { %s134_s6 = scalar_lea.sflag [#allocation3], %s133_s25  ;;  %s162_s15 = scalar_lea.hbm %s745_s1, %s367_s27 }
  0x19   : > { %387 = dma.hbm_to_vmem [thread:$0]  (!%p385_p0), %s145_s5, 128, %s147_s4, %s134_s6  }
  0x1a   : > { %p172_p3 = pnand %p370_p1, %p171_p2  ;;  %s157_s16 = scalar_lea.vmem [#allocation5], %s366_s26 }
  0x1b   : > { %s166_s18 = sshll.u32 %s157_s16, 4  ;;  %s164_s20 = sshll.u32 %s162_s15, 4  ;;  %s167_s18 = int_to_ptr.vmem [resolvable:$true] %s166_s18  ;;  %s165_s20 = int_to_ptr.hbm [resolvable:$true] %s164_s20 }
  0x1c   : > { %s154_s28 = scalar_lea.sflag [#allocation6], %s133_s25  ;;  %175 = sbr.rel (%p172_p3) target bundleno = 59 (0x3b), region = 28 }
  0x1d   : > { %390 = dma.hbm_to_vmem [thread:$0]  (!%p385_p0), %s165_s20, 128, %s167_s18, %s154_s28  }
  0x1e   : > { %s688_s19 = sand.u32 (!%p172_p3), 1, %s578_s10  }
  0x1f   : > { %s691_s29 = sshll.u32 (!%p172_p3), %s688_s19, 3  ;;  %s178_s30 = scalar_lea.sflag (!%p172_p3), [#allocation3], %s688_s19 }
  0x20   : > { %s181_s3 = scalar_lea.vmem (!%p172_p3), [#allocation2], %s691_s29 }
  0x21   : > { %561 = dma.done.wait (%p658_p8), %s178_s30, 128  }
  0x22   : > { %563 = vsyncadd (%p658_p8), %s178_s30, 4294967168  ;;  %s188_s25 = scalar_lea.sflag [#allocation6], %s688_s19  ;;  %s191_s26 = scalar_lea.vmem [#allocation5], %s691_s29 }
  0x23   : > { %565 = dma.done.wait (%p658_p8), %s188_s25, 128  }
  0x24   : > { %567 = vsyncadd (%p658_p8), %s188_s25, 4294967168  ;;  %v225_v0 = vld [vmem:[%s181_s3] sm:$0xff]  ;;  %v226_v1 = vld [vmem:[%s191_s26] sm:$0xff]  ;;  %s375_s27 = sshll.u32 %s586_s12, 3  ;;  %s217_s6 = scalar_lea.vmem [#allocation7], %s691_s29 }
  0x25   : > { %v227_v2 = vmul.f32 %v226_v1, %v225_v0  ;;  %v228_v3 = vsub.f32 1.0, %v226_v1  ;;  %v229_v4 = vsub.f32 1.0, %v225_v0  ;;  %s254_s21 = scalar_lea.hbm %s746_s2, %s375_s27  ;;  %s256_s7 = sshll.u32 %s217_s6, 4  ;;  %s257_s7 = int_to_ptr.vmem [resolvable:$true] %s256_s7 }
  0x26   : > { %s258_s8 = sshll.u32 %s254_s21, 4  ;;  %s244_s15 = scalar_lea.sflag [#allocation4], %s688_s19  ;;  %s259_s8 = int_to_ptr.hbm [resolvable:$true] %s258_s8 }
  0x27   : > { %v230_v5 = vmul.f32 %v229_v4, %v228_v3  ;;  %s522_s16 = sshra.s32 %s259_s8, 4  ;;  %s528_s28 = scalar_lea.hbm %s746_s2, 16  ;;  %s523_s16 = int_to_ptr.hbm [resolvable:$true] %s522_s16 }
  0x28   : > { %s524_s18 = scalar_lea.hbm %s523_s16, 8  ;;  %p529_p7 = scmp.lt.s32.totalorder %s523_s16, %s746_s2 }
  0x29   : > { %v231_v6 = vadd.f32 %v230_v5, %v227_v2  ;;  %p525_p4 = scmp.ne.s32.totalorder %s523_s16, %s524_s18  ;;  %p530_p8 = scmp.lt.s32.totalorder %s528_s28, %s524_s18 }
  0x2b   : > { %v232_v7 = vsub.f32 1.0, %v231_v6  ;;  %v235_v8 = vadd.f32 1e-09, %v231_v6  ;;  %p526_p5 = pnand %p525_p4, %p662_p9  ;;  %p531_p10 = por %p530_p8, %p529_p7 }
  0x2d   : > { %446 = vlog2.f32 %v235_v8  ;;  %v233_v9 = vmul.f32 %v232_v7, %v232_v7  ;;  %p527_p6 = pneg %p526_p5 }
  0x2f   : > { %v234_v10 = vmul.f32 -0.5, %v233_v9  ;;  %p532_p13 = pnand %p531_p10, %p527_p6 }
  0x33   : > { %v447_v11 = vpop.eup %446 }
  0x34   : > { %v237_v12 = vmul.f32 0.6931472, %v447_v11 }
  0x36   : > { %v238_v13 = vmul.f32 %v237_v12, %v234_v10 }
  0x38   : > { %242 = vst [vmem:[%s217_s6] sm:$0xff] %v238_v13 }
  0x39   : > { %535 = shalt.err (!%p532_p13)
}
  0x3a   : > { %382 = dma.vmem_to_hbm [thread:$0]  (%p662_p9), %s257_s7, 128, %s259_s8, %s244_s15  }
  0x3b PF: > { %s270_s19 = sand.u32 1, %s574_s9   ;;  %p392_p0 = pnand %p365_p12, %p669_p11 }
  0x3c   : > { %s271_s3 = scalar_lea.sflag [#allocation4], %s270_s19 }
  0x3d   : > { %p393_p1 = pneg %p392_p0 }
  0x3f   : > { %569 = dma.done.wait (%p393_p1), %s271_s3, 128  }
  0x40   : > { %571 = vsyncadd (%p393_p1), %s271_s3, 4294967168  ;;  %s21_s14 = sadd.s32 1, %s594_s14   ;;  %s751_s9 = smov %s578_s10 }
  0x41   : > { %p18_p2 = scmp.ge.s32.totalorder %s21_s14, 4   ;;  %s752_s10 = smov %s582_s11 }
  0x42   : > { %s753_s11 = smov %s667_s23  ;;  %s754_s12 = smov %s590_s13 }
  0x43   : > { %s755_s13 = smov %s757_s17  ;;  %20 = sbr.rel (!%p18_p2) target bundleno = 8 (0x8), region = 90 }
  0x48   :  { %277 = vsyncpa [#allocation3], 1 }
  0x49   :  { %279 = vsyncpa [#allocation3 + $0x1], 1 }
  0x4a   :  { %280 = vsyncpa [#allocation6], 1 }
  0x4b   :  { %282 = vsyncpa [#allocation6 + $0x1], 1 }
  0x4c   :  { %283 = vsyncpa [#allocation4], 1 }
  0x4d   :  { %285 = vsyncpa [#allocation4 + $0x1], 1 }

</bundles_post_ra>
